<compile_context>
chip_gen: v7x
topology: tpu7x:2x2x1
jax: 0.10.0
libtpu: 0.0.40
codegen_flags: <defaults>
</compile_context>

<pallas_src>
import functools

import jax
import jax.numpy as jnp
from jax.experimental import pallas as pl
from jax.experimental.pallas import tpu as pltpu


def _round_up(x, m):
    return (x + m - 1) // m * m


def _pick_tile(M, tile_m, align):
    """Row-tile size: <= tile_m, aligned, and >=2 grid steps when M permits
    (v7x has 2 TensorCores; dimension_semantics=('parallel',) only helps
    if the grid has >=2 steps)."""
    tm = _round_up(min(tile_m, max(M, 1)), align)
    if M >= 2 * align:
        tm = min(tm, _round_up((M + 1) // 2, align))
    return tm


# ---------------------------------------------------------------------------
# Pallas kernels
# ---------------------------------------------------------------------------

def _mm_bias_relu_kernel(p_ref, w_ref, b_ref, o_ref):
    """conv1 as matmul: bf16 MXU dot -> f32 bias -> ReLU -> bf16 store.

    The 2*x-1 preprocess is folded into (w, b) at init, so there is no f32
    widen/scale path left in the kernel.
    """
    y = jnp.dot(p_ref[...], w_ref[...], preferred_element_type=jnp.float32)
    o_ref[...] = jnp.maximum(y + b_ref[...], 0.0).astype(o_ref.dtype)


def _conv_vq_kernel(p_ref, wc_ref, c_ref, idx_ref):
    """Fused conv2 + vector quantization.

    d[i, j] = ||e_j||^2 - 2 * (p_i @ W2 + b2) . e_j  =  p_i @ Wc[:, j] + c[j]
    (the per-row ||z||^2 term is argmin-invariant and dropped; padded codebook
    lanes carry c = 1e30 so they never win).  The distance tile is transposed
    so the argmin reduces over sublanes and the int32 store is lane-dense.
    """
    d = jnp.dot(p_ref[...], wc_ref[...], preferred_element_type=jnp.float32)
    d = d + c_ref[...]                                   # (tm, Kpad) f32
    dT = d.T                                             # (Kpad, tm), XLU transpose
    dmin = jnp.min(dT, axis=0, keepdims=True)            # (1, tm)
    ids = jax.lax.broadcasted_iota(jnp.int32, dT.shape, 0)
    big = jnp.iinfo(jnp.int32).max
    idx_ref[...] = jnp.min(jnp.where(dT <= dmin, ids, big),
                           axis=0, keepdims=True)        # lane-dense (1, tm)


# ---------------------------------------------------------------------------
# pallas_call wrappers
# ---------------------------------------------------------------------------

def conv_matmul(patches, w_bf16, b_f32, *, out_dtype, tile_m=4096):
    """(M, K) bf16 patches @ (K, N) bf16 weights + bias + ReLU, M-tiled."""
    M, K = patches.shape
    _, N = w_bf16.shape
    tm = _pick_tile(M, tile_m, align=16)                 # bf16 packs 16 sublanes/vreg
    Mp = _round_up(M, tm)
    if Mp != M:
        patches = jnp.pad(patches, ((0, Mp - M), (0, 0)))
    out = pl.pallas_call(
        _mm_bias_relu_kernel,
        out_shape=jax.ShapeDtypeStruct((Mp, N), out_dtype),
        grid=(Mp // tm,),
        in_specs=[
            pl.BlockSpec((tm, K), lambda i: (i, 0)),     # streamed row tiles
            pl.BlockSpec((K, N), lambda i: (0, 0)),      # resident weights
            pl.BlockSpec((1, N), lambda i: (0, 0)),      # resident bias
        ],
        out_specs=pl.BlockSpec((tm, N), lambda i: (i, 0)),
        compiler_params=pltpu.CompilerParams(
            dimension_semantics=("parallel",),
            vmem_limit_bytes=32 * 1024 * 1024),
        cost_estimate=pl.CostEstimate(
            flops=2 * Mp * K * N, transcendentals=0,
            bytes_accessed=(Mp * K * 2 + K * N * 2 + N * 4
                            + Mp * N * jnp.dtype(out_dtype).itemsize)),
    )(patches, w_bf16, b_f32)
    return out[:M]


def conv_vq_indices(patches, wc_bf16, c_f32, *, tile_m=1024):
    """Fused conv2 + VQ: (M, K) patches -> (M,) int32 nearest-codebook indices.

    tile_m=1024 keeps the double-buffered (tm, 512) bf16 stream + f32 distance
    temporaries comfortably inside v7x's 64 MiB VMEM (32 MiB scoped); raise to
    2048 on v5e/v6e if desired.
    """
    M, K = patches.shape
    _, Kpad = wc_bf16.shape
    tm = _pick_tile(M, tile_m, align=128)                # lane-dense output rows
    Mp = _round_up(M, tm)
    if Mp != M:
        patches = jnp.pad(patches, ((0, Mp - M), (0, 0)))
    out = pl.pallas_call(
        _conv_vq_kernel,
        out_shape=jax.ShapeDtypeStruct((1, Mp), jnp.int32),
        grid=(Mp // tm,),
        in_specs=[
            pl.BlockSpec((tm, K), lambda i: (i, 0)),     # streamed row tiles
            pl.BlockSpec((K, Kpad), lambda i: (0, 0)),   # resident fused conv2+(-2E^T)
            pl.BlockSpec((1, Kpad), lambda i: (0, 0)),   # resident fused bias/||e||^2
        ],
        out_specs=pl.BlockSpec((1, tm), lambda i: (0, i)),
        compiler_params=pltpu.CompilerParams(
            dimension_semantics=("parallel",),
            vmem_limit_bytes=32 * 1024 * 1024),
        cost_estimate=pl.CostEstimate(
            flops=2 * Mp * K * Kpad, transcendentals=0,
            bytes_accessed=Mp * K * 2 + K * Kpad * 2 + Kpad * 4 + Mp * 4),
    )(patches, wc_bf16, c_f32)
    return out[0, :M]


# ---------------------------------------------------------------------------
# Plain-JAX glue: one relayout pass per layer (pure layout, no compute)
# ---------------------------------------------------------------------------

def patches_4x4_s2(x_nhwc, pad_value):
    """4x4 / stride-2 / pad-1 conv patches: (B,H,W,C) -> (B*Ho*Wo, 16*C).

    Single pad + 16 strided slices + concat (XLA fuses this into one relayout
    pass) replacing the former space-to-depth + im2col chain.  Tap order is
    (kh, kw, c) so conv weights flatten with a plain HWIO reshape.
    """
    x = jnp.pad(x_nhwc, ((0, 0), (1, 1), (1, 1), (0, 0)),
                constant_values=pad_value)
    B, Hp, Wp, C = x.shape
    Ho, Wo = (Hp - 4) // 2 + 1, (Wp - 4) // 2 + 1
    taps = [x[:, kh:kh + 2 * Ho - 1:2, kw:kw + 2 * Wo - 1:2, :]
            for kh in range(4) for kw in range(4)]
    patches = jnp.concatenate(taps, axis=-1)             # (B, Ho, Wo, 16*C)
    # TODO(synk): pulling this extraction into the Pallas kernels (shifted
    # BlockSpecs / manual DMA) would remove the 4x patch slab from HBM entirely.
    return patches.reshape(B * Ho * Wo, 16 * C), (B, Ho, Wo)


# ---------------------------------------------------------------------------
# The synthetic VQGANProcessor
# ---------------------------------------------------------------------------

class VQGANProcessorPallas:
    """Mirrors VQGANProcessor.forward: images -> 2x-1 -> encode -> VQ indices."""

    def __init__(self, key, in_ch=3, hidden=32, embed_dim=16, n_embed=64,
                 codebook_pad=128):
        self.in_ch, self.hidden = in_ch, hidden
        self.embed_dim, self.n_embed = embed_dim, n_embed
        k1, k2, k3, k4, k5 = jax.random.split(key, 5)
        w1 = 0.1 * jax.random.normal(k1, (4, 4, in_ch, hidden), jnp.float32)
        b1 = 0.05 * jax.random.normal(k2, (hidden,), jnp.float32)
        w2 = 0.1 * jax.random.normal(k3, (4, 4, hidden, embed_dim), jnp.float32)
        b2 = 0.05 * jax.random.normal(k4, (embed_dim,), jnp.float32)
        codebook = jax.random.normal(k5, (n_embed, embed_dim), jnp.float32)

        # --- conv1: fold the 2*x-1 preprocess into the weights/bias. ---------
        # out = sum 2*w1*x + (b1 - sum w1) = sum w1*(2x-1) + b1.  With the raw
        # input padded by 0.5, border taps contribute w1*(2*0.5-1) = 0, exactly
        # matching PyTorch (preprocess first, then zero-pad inside the conv).
        w1_flat = w1.reshape(16 * in_ch, hidden)                 # plain HWIO flatten
        self.w1_mm = (2.0 * w1_flat).astype(jnp.bfloat16)        # (16*Cin, hidden)
        self.b1_mm = (b1 - jnp.sum(w1_flat, axis=0)).reshape(1, hidden)

        # --- conv2 + codebook distance folded into one lane-dense matmul. ----
        #   d[i,j] = ||e_j||^2 - 2*(p_i@W2 + b2).e_j = p_i @ Wc[:,j] + c[j]
        # Codebook zero-padded to 128 lanes; padded lanes get c = 1e30.
        w2_flat = w2.reshape(16 * hidden, embed_dim)
        e_pad = jnp.zeros((codebook_pad, embed_dim), jnp.float32).at[:n_embed].set(
            codebook)
        wc = w2_flat @ (-2.0 * e_pad.T)                          # (16*hidden, Kpad)
        c = jnp.full((codebook_pad,), 1e30, jnp.float32).at[:n_embed].set(
            jnp.sum(codebook * codebook, axis=-1))
        c = c - 2.0 * (b2 @ e_pad.T)
        # TODO(synk): keep wc in f32 with precision=HIGHEST if bit-faithful
        # argmin vs an f32 PyTorch reference is required (near-ties can flip).
        self.wc_mm = wc.astype(jnp.bfloat16)                     # (16*hidden, Kpad)
        self.c_mm = c.reshape(1, codebook_pad)

    def __call__(self, images_nchw):
        # NCHW (PyTorch) -> NHWC, bf16 slabs for the MXU.
        x = jnp.transpose(images_nchw, (0, 2, 3, 1)).astype(jnp.bfloat16)

        # conv1 (4x4, s2, p1); preprocess folded into w1/b1, pad_value=0.5.
        p1, (B, H1, W1) = patches_4x4_s2(x, pad_value=0.5)
        h1 = conv_matmul(p1, self.w1_mm, self.b1_mm,
                         out_dtype=jnp.bfloat16, tile_m=4096)
        # TODO(synk): h1 (N=32) is a lane-sparse store; emitting it directly in
        # a 128-channel space-to-depth layout would make it lane-dense and
        # remove the layer-2 relayout pass.
        h1 = h1.reshape(B, H1, W1, self.hidden)

        # conv2 (4x4, s2, p1) fused with vector quantization (argmin indices).
        p2, (B, H2, W2) = patches_4x4_s2(h1, pad_value=0.0)
        idx = conv_vq_indices(p2, self.wc_mm, self.c_mm, tile_m=1024)

        # TODO(synk): a real taming-transformers VQGAN has a deeper ResNet+attn
        # encoder; this synthetic 2-conv encoder reproduces the structure
        # (preprocess -> downsample -> quantize -> indices), not trained weights.
        return idx.reshape(B, H2, W2)


if __name__ == "__main__":
    key = jax.random.PRNGKey(0)
    pkey, xkey = jax.random.split(key)

    model = VQGANProcessorPallas(pkey)
    # Images in [0, 1] (the module's preprocess maps them to [-1, 1]); NCHW.
    images = jax.random.uniform(xkey, (2, 3, 16, 16), dtype=jnp.float32)

    fwd = jax.jit(lambda imgs: model(imgs))
    indices = fwd(images)
    jax.block_until_ready(indices)

    assert indices.shape == (2, 4, 4) and indices.dtype == jnp.int32
    assert bool(jnp.all((indices >= 0) & (indices < model.n_embed)))
    print("KERNEL_OK")
</pallas_src>

<mosaic_0001>
module attributes {stable_mosaic.version = 11 : i64} {
  func.func @_mm_bias_relu_kernel(%arg0: i32, %arg1: memref<64x48xbf16, #tpu.memory_space<vmem>>, %arg2: memref<48x32xbf16, #tpu.memory_space<vmem>>, %arg3: memref<1x32xf32, #tpu.memory_space<vmem>>, %arg4: memref<64x32xbf16, #tpu.memory_space<vmem>>) attributes {dimension_semantics = [#tpu.dimension_semantics<parallel>], iteration_bounds = array<i64: 2>, scalar_prefetch = 0 : i64, scratch_operands = 0 : i64, tpu.core_type = #tpu.core_type<tc>, window_params = [{transform_indices = @transform_0, window_bounds = array<i64: 64, 48>}, {pipeline_mode = #tpu.pipeline_mode<synchronous>, transform_indices = @transform_1, window_bounds = array<i64: 48, 32>}, {pipeline_mode = #tpu.pipeline_mode<synchronous>, transform_indices = @transform_2, window_bounds = array<i64: 1, 32>}, {transform_indices = @transform_3, window_bounds = array<i64: 64, 32>}]} {
    %c0 = arith.constant 0 : index
    %c0_0 = arith.constant 0 : index
    %0 = vector.load %arg1[%c0, %c0_0] : memref<64x48xbf16, #tpu.memory_space<vmem>>, vector<64x48xbf16>
    %c0_1 = arith.constant 0 : index
    %c0_2 = arith.constant 0 : index
    %1 = vector.load %arg2[%c0_1, %c0_2] : memref<48x32xbf16, #tpu.memory_space<vmem>>, vector<48x32xbf16>
    %cst = arith.constant dense<0.000000e+00> : vector<64x32xf32>
    %2 = tpu.matmul %0, %1, %cst {dimension_numbers = #tpu.dot_dimension_numbers<[1], [0], [0], [1], [0, 0, 1, 1], [], []>} : vector<64x48xbf16>, vector<48x32xbf16>, vector<64x32xf32> -> vector<64x32xf32>
    %c0_3 = arith.constant 0 : index
    %c0_4 = arith.constant 0 : index
    %3 = vector.load %arg3[%c0_3, %c0_4] : memref<1x32xf32, #tpu.memory_space<vmem>>, vector<1x32xf32>
    %4 = vector.broadcast %3 : vector<1x32xf32> to vector<64x32xf32>
    %5 = arith.addf %2, %4 : vector<64x32xf32>
    %cst_5 = arith.constant 0.000000e+00 : f32
    %6 = vector.broadcast %cst_5 : f32 to vector<64x32xf32>
    %7 = arith.maximumf %5, %6 : vector<64x32xf32>
    %8 = arith.truncf %7 : vector<64x32xf32> to vector<64x32xbf16>
    %c0_6 = arith.constant 0 : index
    %c0_7 = arith.constant 0 : index
    %9 = vector.load %arg4[%c0_6, %c0_7] : memref<64x32xbf16, #tpu.memory_space<vmem>>, vector<64x32xbf16>
    tpu.vector_store %arg4[%c0_6, %c0_7], %8 {strides = array<i32>} : memref<64x32xbf16, #tpu.memory_space<vmem>>, vector<64x32xbf16>,
    return
  }
  func.func @transform_0(%arg0: i32) -> (i32, i32) {
    %c0_i32 = arith.constant 0 : i32
    %c0_i32_0 = arith.constant 0 : i32
    return %arg0, %c0_i32 : i32, i32
  }
  func.func @transform_1(%arg0: i32) -> (i32, i32) {
    %c0_i32 = arith.constant 0 : i32
    %c0_i32_0 = arith.constant 0 : i32
    %c0_i32_1 = arith.constant 0 : i32
    return %c0_i32, %c0_i32_0 : i32, i32
  }
  func.func @transform_2(%arg0: i32) -> (i32, i32) {
    %c0_i32 = arith.constant 0 : i32
    %c0_i32_0 = arith.constant 0 : i32
    %c0_i32_1 = arith.constant 0 : i32
    return %c0_i32, %c0_i32_0 : i32, i32
  }
  func.func @transform_3(%arg0: i32) -> (i32, i32) {
    %c0_i32 = arith.constant 0 : i32
    %c0_i32_0 = arith.constant 0 : i32
    return %arg0, %c0_i32 : i32, i32
  }
}

module attributes {stable_mosaic.version = 11 : i64} {
  func.func @_conv_vq_kernel(%arg0: i32, %arg1: memref<128x512xbf16, #tpu.memory_space<vmem>>, %arg2: memref<512x128xbf16, #tpu.memory_space<vmem>>, %arg3: memref<1x128xf32, #tpu.memory_space<vmem>>, %arg4: memref<1x128xi32, #tpu.memory_space<vmem>>) attributes {dimension_semantics = [#tpu.dimension_semantics<parallel>], iteration_bounds = array<i64: 1>, scalar_prefetch = 0 : i64, scratch_operands = 0 : i64, tpu.core_type = #tpu.core_type<tc>, window_params = [{transform_indices = @transform_0, window_bounds = array<i64: 128, 512>}, {pipeline_mode = #tpu.pipeline_mode<synchronous>, transform_indices = @transform_1, window_bounds = array<i64: 512, 128>}, {pipeline_mode = #tpu.pipeline_mode<synchronous>, transform_indices = @transform_2, window_bounds = array<i64: 1, 128>}, {transform_indices = @transform_3, window_bounds = array<i64: 1, 128>}]} {
    %c0 = arith.constant 0 : index
    %c0_0 = arith.constant 0 : index
    %0 = vector.load %arg1[%c0, %c0_0] : memref<128x512xbf16, #tpu.memory_space<vmem>>, vector<128x512xbf16>
    %c0_1 = arith.constant 0 : index
    %c0_2 = arith.constant 0 : index
    %1 = vector.load %arg2[%c0_1, %c0_2] : memref<512x128xbf16, #tpu.memory_space<vmem>>, vector<512x128xbf16>
    %cst = arith.constant dense<0.000000e+00> : vector<128x128xf32>
    %2 = tpu.matmul %0, %1, %cst {dimension_numbers = #tpu.dot_dimension_numbers<[1], [0], [0], [1], [0, 0, 1, 1], [], []>} : vector<128x512xbf16>, vector<512x128xbf16>, vector<128x128xf32> -> vector<128x128xf32>
    %c0_3 = arith.constant 0 : index
    %c0_4 = arith.constant 0 : index
    %3 = vector.load %arg3[%c0_3, %c0_4] : memref<1x128xf32, #tpu.memory_space<vmem>>, vector<1x128xf32>
    %4 = vector.broadcast %3 : vector<1x128xf32> to vector<128x128xf32>
    %5 = arith.addf %2, %4 : vector<128x128xf32>
    %6 = tpu.transpose %5, [1, 0] : vector<128x128xf32> -> vector<128x128xf32>
    %cst_5 = arith.constant dense<0x7F800000> : vector<128xf32>
    %7 = vector.multi_reduction <minimumf>, %6, %cst_5 [0] : vector<128x128xf32> to vector<128xf32>
    %8 = vector.shape_cast %7 : vector<128xf32> to vector<1x128xf32>
    %9 = tpu.iota {dimensions = array<i32: 0>} : vector<128x128xi32>
    %10 = vector.broadcast %8 : vector<1x128xf32> to vector<128x128xf32>
    %11 = arith.cmpf ole, %6, %10 : vector<128x128xf32>
    %c2147483647_i32 = arith.constant 2147483647 : i32
    %12 = vector.broadcast %c2147483647_i32 : i32 to vector<128x128xi32>
    %13 = arith.select %11, %9, %12 : vector<128x128xi1>, vector<128x128xi32>
    %cst_6 = arith.constant dense<2147483647> : vector<128xi32>
    %14 = vector.multi_reduction <minsi>, %13, %cst_6 [0] : vector<128x128xi32> to vector<128xi32>
    %15 = vector.shape_cast %14 : vector<128xi32> to vector<1x128xi32>
    %c0_7 = arith.constant 0 : index
    %c0_8 = arith.constant 0 : index
    %16 = vector.load %arg4[%c0_7, %c0_8] : memref<1x128xi32, #tpu.memory_space<vmem>>, vector<1x128xi32>
    tpu.vector_store %arg4[%c0_7, %c0_8], %15 {strides = array<i32>} : memref<1x128xi32, #tpu.memory_space<vmem>>, vector<1x128xi32>,
    return
  }
  func.func @transform_0(%arg0: i32) -> (i32, i32) {
    %c0_i32 = arith.constant 0 : i32
    %c0_i32_0 = arith.constant 0 : i32
    return %arg0, %c0_i32 : i32, i32
  }
  func.func @transform_1(%arg0: i32) -> (i32, i32) {
    %c0_i32 = arith.constant 0 : i32
    %c0_i32_0 = arith.constant 0 : i32
    %c0_i32_1 = arith.constant 0 : i32
    return %c0_i32, %c0_i32_0 : i32, i32
  }
  func.func @transform_2(%arg0: i32) -> (i32, i32) {
    %c0_i32 = arith.constant 0 : i32
    %c0_i32_0 = arith.constant 0 : i32
    %c0_i32_1 = arith.constant 0 : i32
    return %c0_i32, %c0_i32_0 : i32, i32
  }
  func.func @transform_3(%arg0: i32) -> (i32, i32) {
    %c0_i32 = arith.constant 0 : i32
    %c0_i32_0 = arith.constant 0 : i32
    return %c0_i32, %arg0 : i32, i32
  }
}

</mosaic_0001>

<bundles_post_ra>
// kernel: squeeze.1
= control target key start
LH: loop header
LB: loop body
LE: loop exit
PB: predicated region body
PF: predicated region fallthrough
CT: control target
= control target key end

     0   :  { %s146_s0 = inlined_call_operand.vmem [shape: s32[32], index: 0, kind: input, shape index: {}]   ;;  %s147_s1 = inlined_call_operand.hbm [shape: s32[2,4,4], index: 1, kind: output, shape index: {}]  }
   0x1   :  { %v5_v0 = vld [vmem:[%s146_s0] sm:$0x1] }
   0x2   :  { %6 = vst [vmem:[#allocation3] sm:$0x1] %v5_v0 }
   0x3   :  { %2 = vsyncpa [#allocation1], 0  ;;  %s105_s0 = smov 124   ;;  %s106_s8 = smov 116   ;;  %vm8_vm0 = vcmask 31744  }
   0x4   :  { %s107_s9 = smov 120   ;;  %s108_s10 = smov 112  }
   0x5   :  { %s109_s11 = smov 108   ;;  %s110_s12 = smov 104  }
   0x6   :  { %s111_s13 = smov 100   ;;  %s112_s14 = smov [#allocation0]  }
   0x7   :  { %s67_s15 = sshll.u32 %s112_s14, 4  ;;  %s68_s15 = int_to_ptr.vmem [resolvable:$true] %s67_s15 }
   0x8   :  { %s81_s16 = scalar_lea.vmem %s68_s15, 128  ;;  %p86_p1 = scmp.lt.s32.totalorder %s68_s15, %s68_s15 }
   0x9   :  { %v10_v1 = vld [vmem:[#allocation3] sm:$0x1]   ;;  %p82_p0 = scmp.ne.s32.totalorder %s68_s15, %s81_s16  ;;  %p87_p2 = scmp.lt.s32.totalorder %s81_s16, %s81_s16 }
   0xa   :  { %v22_v2 = vld [vmem:[#allocation3] sm:$0x1]   ;;  %11 = vrot.lane.b32.xlu0 %v10_v1, %s105_s0 }
   0xb   :  { %23 = vrot.lane.b32.xlu1 %v22_v2, %s106_s8  ;;  %v16_v3 = vld [vmem:[#allocation3] sm:$0x1]   ;;  %p88_p3 = por %p87_p2, %p86_p1 }
   0xc   :  { %v28_v4 = vld [vmem:[#allocation3] sm:$0x1]  }
   0xd   :  { %v7_v5 = vld [vmem:[#allocation3] sm:$0x1]   ;;  %p89_p4 = pnand %p88_p3, %p82_p0 }
   0xe   :  { %9 = vst.msk [vmem:[#allocation2] sm:$0x1] %vm8_vm0, %v7_v5   ;;  %17 = vrot.lane.b32.xlu0 %v16_v3, %s107_s9  ;;  %v34_v6 = vld [vmem:[#allocation3] sm:$0x1]  }
   0xf   :  { %29 = vrot.lane.b32.xlu1 %v28_v4, %s108_s10  ;;  %v40_v7 = vld [vmem:[#allocation3] sm:$0x1]  }
  0x10   :  { %v46_v8 = vld [vmem:[#allocation3] sm:$0x1]  }
  0x12   :  { %35 = vrot.lane.b32.xlu0 %v34_v6, %s109_s11 }
  0x13   :  { %41 = vrot.lane.b32.xlu1 %v40_v7, %s110_s12 }
  0x16   :  { %47 = vrot.lane.b32.xlu0 %v46_v8, %s111_s13 }
  0x7c   :  { %v12_v9 = vpop.permute.xlu0 %11  }
  0x7d   :  { %v24_v10 = vpop.permute.xlu1 %23   ;;  %15 = vst.msk [vmem:[#allocation2 + $0x1] sm:$0x1] %vm8_vm0, %v12_v9  }
  0x7e   :  { %27 = vst.msk [vmem:[#allocation2 + $0x3] sm:$0x1] %vm8_vm0, %v24_v10  }
  0x80   :  { %v18_v11 = vpop.permute.xlu0 %17  }
  0x81   :  { %v30_v12 = vpop.permute.xlu1 %29   ;;  %21 = vst.msk [vmem:[#allocation2 + $0x2] sm:$0x1] %vm8_vm0, %v18_v11  }
  0x82   :  { %33 = vst.msk [vmem:[#allocation2 + $0x8] sm:$0x1] %vm8_vm0, %v30_v12  }
  0x84   :  { %v36_v13 = vpop.permute.xlu0 %35  }
  0x85   :  { %v42_v14 = vpop.permute.xlu1 %41   ;;  %39 = vst.msk [vmem:[#allocation2 + $0x9] sm:$0x1] %vm8_vm0, %v36_v13  }
  0x86   :  { %45 = vst.msk [vmem:[#allocation2 + $0xa] sm:$0x1] %vm8_vm0, %v42_v14  }
  0x88   :  { %v48_v15 = vpop.permute.xlu0 %47   ;;  %v55_v16 = vld [vmem:[#allocation2] sm:$0xf] }
  0x89   :  { %51 = vst.msk [vmem:[#allocation2 + $0xb] sm:$0x1] %vm8_vm0, %v48_v15   ;;  %57 = vst [vmem:[#allocation0] sm:$0xf] %v55_v16 }
  0x90   :  { %v59_v17 = vld [vmem:[#allocation2 + $0x8] sm:$0xf] }
  0x91   :  { %62 = vst [vmem:[#allocation0 + $0x4] sm:$0xf] %v59_v17 }
  0x92   :  { %92 = shalt.err (!%p89_p4)
}
  0x93   :  { %s93_s19 = scalar_lea.hbm %s147_s1, 128 }
  0x94   :  { %p94_p5 = scmp.ne.s32.totalorder %s147_s1, %s93_s19  ;;  %p97_p6 = scmp.lt.u32.totalorder %s93_s19, %s147_s1 }
  0x96   :  { %p99_p7 = pnand %p97_p6, %p94_p5 }
  0x98   :  { %102 = shalt.err (!%p99_p7)
}
  0x99   :  { %70 = dma.vmem_to_hbm [thread:$0]  %s68_s15, 128, %s147_s1, [#allocation1]  }
  0x9a   :  { %103 = dma.done.wait [#allocation1], 128  }
  0x9b   :  { %104 = vsyncadd [#allocation1], 4294967168 }
  0x9c   :  { %72 = vsyncpa [#allocation1], 1 }

// kernel: _lambda_.2
= control target key start
LH: loop header
LB: loop body
LE: loop exit
PB: predicated region body
PF: predicated region fallthrough
CT: control target
= control target key end

     0   :  { %s526_s12 = smov 0   ;;  %s570_s0 = inlined_call_operand.vmem [shape: bf16[128,48], index: 0, kind: input, shape index: {}]   ;;  %s571_s1 = inlined_call_operand.vmem [shape: bf16[48,32], index: 1, kind: input, shape index: {}]   ;;  %s572_s2 = inlined_call_operand.vmem [shape: f32[1,32], index: 2, kind: input, shape index: {}]   ;;  %s573_s3 = inlined_call_operand.vmem [shape: bf16[128,32], index: 3, kind: output, shape index: {}]  }
   0x1 LB: > { %s417_s13 = sadd.s32 4294967295, %s504_s12   ;;  %p421_p0 = scmp.ge.s32.totalorder %s504_s12, 1  ;;  %s504_s12 = sphi %s526_s12, %s13_s12  }
   0x2   : > { %p138_p1 = scmp.lt.s32.totalorder %s504_s12, 3 }
   0x4   : > { %p139_p2 = pnand %p421_p0, %p138_p1 }
   0x5   : > { %v491_v0 = vld [vmem:[%s571_s1] sm:$0xff] (!%p139_p2)   ;;  %s422_s16 = sshll.u32 (!%p139_p2), %s417_s13, 3  ;;  %v492_v1 = vld [vmem:[%s571_s1 + $0x8] sm:$0xff] (!%p139_p2)   ;;  %v493_v2 = vld [vmem:[%s571_s1 + $0x10] sm:$0xff] (!%p139_p2)   ;;  %vm234_vm0 = vcmask (!%p139_p2), 392192   ;;  %vm352_vm1 = vcmask (!%p139_p2), 257024  }
   0x6   : > { %142 = sbr.rel (%p139_p2) target bundleno = 240 (0xf0), region = 32  ;;  %p163_p3 = scmp.lt.s32.totalorder (!%p139_p2), %s422_s16, 15  ;;  %463 = vmatprep.subr.bf16.mxu0 (!%p139_p2), %v491_v0  ;;  %477 = vmatprep.subr.bf16.mxu1 (!%p139_p2), %v491_v0  ;;  %v426_v7 = vld [vmem:[%s572_s2] ss:$0 sm:$0xff] (!%p139_p2) }
   0x7   : > { %464 = vmatpush3.bf16.msra.mxu0 (!%p139_p2), %v491_v0  ;;  %480 = vmatpush3.bf16.msra.mxu1 (!%p139_p2), %v491_v0 }
   0x8   : > { %465 = vmatprep.subr.bf16.mxu0 (!%p139_p2), %v492_v1  ;;  %478 = vmatprep.subr.bf16.mxu1 (!%p139_p2), %v492_v1 }
   0xb   : > { %466 = vmatpush3.bf16.msra.mxu0 (!%p139_p2), %v492_v1  ;;  %481 = vmatpush3.bf16.msra.mxu1 (!%p139_p2), %v492_v1 }
   0xc   : > { %467 = vmatprep.subr.bf16.mxu0 (!%p139_p2), %v493_v2  ;;  %479 = vmatprep.subr.bf16.mxu1 (!%p139_p2), %v493_v2 }
   0xd   : > { %s575_s16 = smov (!%p163_p3, %s422_s16), 15 }
   0xe   : > { %s423_s21 = sshll.u32 %s575_s16, 2 }
   0xf   : > { %s166_s24 = scalar_lea.vmem %s570_s0, %s423_s21  ;;  %468 = vmatpush3.bf16.msra.mxu0 %v493_v2  ;;  %482 = vmatpush3.bf16.msra.mxu1 %v493_v2  ;;  %s172_s29 = scalar_lea.vmem %s573_s3, %s423_s21 }
  0x10   : > { %v494_v3 = vld [vmem:[%s166_s24] sm:$0xff]   ;;  %v495_v4 = vld [vmem:[%s166_s24 + $0x10] sm:$0xff]   ;;  %v496_v5 = vld [vmem:[%s166_s24 + $0x8] sm:$0xff]  }
  0x11   : > { %469 = vmatprep.mubr.msk.bf16.mxu0 %vm234_vm0, %v494_v3  ;;  %473 = vmatprep.mubr.msk.bf16.mxu1 %vm234_vm0, %v495_v4  ;;  %v497_v6 = vld [vmem:[%s166_s24 + $0x18] sm:$0xff]  }
  0x12   : > { %470 = vmatmul.mubr.msk.bf16.vlgmr.msra.gmra.mrb[0].mxu0 %vm234_vm0, %v496_v5  ;;  %474 = vmatmul.mubr.msk.bf16.vlgmr.msra.gmra.mrb[0].mxu1 %vm234_vm0, %v497_v6 }
  0xe5   : > { %v471_v8 = vpop.f32.mrb[0].mxu0  ;;  %v475_v9 = vpop.f32.mrb[0].mxu1 }
  0xe6   : > { %v290_v10 = vadd.f32 %v471_v8, %v426_v7  ;;  %v306_v11 = vadd.f32 %v475_v9, %v426_v7  ;;  %v281_v12 = vpop.f32.mrb[1].mxu0  ;;  %v297_v13 = vpop.f32.mrb[1].mxu1 }
  0xe7   : > { %v282_v14 = vadd.f32 %v426_v7, %v281_v12  ;;  %v298_v15 = vadd.f32 %v426_v7, %v297_v13  ;;  %v472_v16 = vpop.f32.mrb[2].mxu0  ;;  %v476_v17 = vpop.f32.mrb[2].mxu1 }
  0xe8   : > { %v314_v18 = vmax.f32 %v290_v10, 0.0  ;;  %v318_v19 = vmax.f32 %v306_v11, 0.0  ;;  %v293_v20 = vadd.f32 %v472_v16, %v426_v7  ;;  %v309_v21 = vadd.f32 %v476_v17, %v426_v7  ;;  %v284_v22 = vpop.f32.mrb[3].mxu0  ;;  %v300_v23 = vpop.f32.mrb[3].mxu1 }
  0xe9   : > { %v312_v24 = vmax.f32 %v282_v14, 0.0  ;;  %v316_v25 = vmax.f32 %v298_v15, 0.0  ;;  %v285_v26 = vadd.f32 %v426_v7, %v284_v22  ;;  %v301_v27 = vadd.f32 %v426_v7, %v300_v23 }
  0xea   : > { %v450_v28 = vpack.c.bf16 %v314_v18, %v314_v18  ;;  %v454_v29 = vpack.c.bf16 %v318_v19, %v318_v19  ;;  %v315_v30 = vmax.f32 %v293_v20, 0.0  ;;  %v319_v31 = vmax.f32 %v309_v21, 0.0 }
  0xeb   : > { %v448_v32 = vpack.c.bf16 %v312_v24, %v312_v24  ;;  %v452_v33 = vpack.c.bf16 %v316_v25, %v316_v25  ;;  %v313_v34 = vmax.f32 %v285_v26, 0.0  ;;  %v317_v35 = vmax.f32 %v301_v27, 0.0 }
  0xec   : > { %355 = vst.msk [vmem:[%s172_s29 + $0x8] sm:$0xf] %vm352_vm1, %v450_v28  ;;  %359 = vst.msk [vmem:[%s172_s29 + $0x18] sm:$0xf] %vm352_vm1, %v454_v29  ;;  %v451_v36 = vpack.c.bf16 %v315_v30, %v315_v30  ;;  %v455_v37 = vpack.c.bf16 %v319_v31, %v319_v31 }
  0xed   : > { %353 = vst.msk [vmem:[%s172_s29] sm:$0xf] %vm352_vm1, %v448_v32  ;;  %357 = vst.msk [vmem:[%s172_s29 + $0x10] sm:$0xf] %vm352_vm1, %v452_v33  ;;  %v449_v38 = vpack.c.bf16 %v313_v34, %v313_v34  ;;  %v453_v39 = vpack.c.bf16 %v317_v35, %v317_v35 }
  0xee   : > { %356 = vst.msk [vmem:[%s172_s29 + $0xc] sm:$0xf] %vm352_vm1, %v451_v36  ;;  %360 = vst.msk [vmem:[%s172_s29 + $0x1c] sm:$0xf] %vm352_vm1, %v455_v37 }
  0xef   : > { %354 = vst.msk [vmem:[%s172_s29 + $0x4] sm:$0xf] %vm352_vm1, %v449_v38  ;;  %358 = vst.msk [vmem:[%s172_s29 + $0x14] sm:$0xf] %vm352_vm1, %v453_v39 }
  0xf0 PF: > { %s13_s12 = sadd.s32 1, %s504_s12  }
  0xf1   : > { %p10_p4 = scmp.ge.s32.totalorder %s13_s12, 4  }
  0xf3   :  { %12 = sbr.rel (!%p10_p4) target bundleno = 1 (0x1), region = 62 }

// kernel: _lambda_.3
= control target key start
LH: loop header
LB: loop body
LE: loop exit
PB: predicated region body
PF: predicated region fallthrough
CT: control target
= control target key end

     0   :  { %s1409_s1 = inlined_call_operand.vmem [shape: bf16[512,128], index: 1, kind: input, shape index: {}]   ;;  %s1410_s0 = inlined_call_operand.vmem [shape: bf16[128,512], index: 0, kind: input, shape index: {}]   ;;  %s1411_s2 = inlined_call_operand.vmem [shape: f32[1,128], index: 2, kind: input, shape index: {}]   ;;  %s1412_s3 = inlined_call_operand.vmem [shape: s32[1,128], index: 3, kind: output, shape index: {}]  }
   0x1   :  { %v1003_v0 = vld [vmem:[%s1409_s1 + $0x40] sm:$0xff]   ;;  %v1007_v4 = vld [vmem:[%s1409_s1 + $0x48] sm:$0xff]   ;;  %v1011_v8 = vld [vmem:[%s1409_s1 + $0x50] sm:$0xff]  }
   0x2   :  { %v1004_v1 = vld [vmem:[%s1409_s1 + $0xc0] sm:$0xff]   ;;  %875 = vmatprep.subr.bf16.mxu0 %v1003_v0  ;;  %v1008_v5 = vld [vmem:[%s1409_s1 + $0xc8] sm:$0xff]   ;;  %v1012_v9 = vld [vmem:[%s1409_s1 + $0xd0] sm:$0xff]  }
   0x3   :  { %v1005_v2 = vld [vmem:[%s1409_s1] sm:$0xff]   ;;  %939 = vmatprep.subr.bf16.mxu1 %v1004_v1  ;;  %v1009_v6 = vld [vmem:[%s1409_s1 + $0x8] sm:$0xff]   ;;  %v1013_v10 = vld [vmem:[%s1409_s1 + $0x10] sm:$0xff]  }
   0x4   :  { %v1006_v3 = vld [vmem:[%s1409_s1 + $0x80] sm:$0xff]   ;;  %876 = vmatpush3.bf16.msra.mxu0 %v1005_v2  ;;  %v1010_v7 = vld [vmem:[%s1409_s1 + $0x88] sm:$0xff]   ;;  %v1014_v11 = vld [vmem:[%s1409_s1 + $0x90] sm:$0xff]  }
   0x5   :  { %940 = vmatpush3.bf16.msra.mxu1 %v1006_v3  ;;  %877 = vmatprep.subr.bf16.mxu0 %v1007_v4  ;;  %v1015_v12 = vld [vmem:[%s1409_s1 + $0x58] sm:$0xff]   ;;  %v1019_v16 = vld [vmem:[%s1409_s1 + $0x60] sm:$0xff]   ;;  %v1023_v20 = vld [vmem:[%s1409_s1 + $0x68] sm:$0xff]  }
   0x6   :  { %941 = vmatprep.subr.bf16.mxu1 %v1008_v5  ;;  %v1016_v13 = vld [vmem:[%s1409_s1 + $0xd8] sm:$0xff]   ;;  %v1020_v17 = vld [vmem:[%s1409_s1 + $0xe0] sm:$0xff]   ;;  %v1024_v21 = vld [vmem:[%s1409_s1 + $0xe8] sm:$0xff]  }
   0x7   :  { %v1017_v14 = vld [vmem:[%s1409_s1 + $0x18] sm:$0xff]   ;;  %v1021_v18 = vld [vmem:[%s1409_s1 + $0x20] sm:$0xff]   ;;  %v1025_v22 = vld [vmem:[%s1409_s1 + $0x28] sm:$0xff]  }
   0x8   :  { %878 = vmatpush3.bf16.msra.mxu0 %v1009_v6  ;;  %v1018_v15 = vld [vmem:[%s1409_s1 + $0x98] sm:$0xff]   ;;  %v1022_v19 = vld [vmem:[%s1409_s1 + $0xa0] sm:$0xff]   ;;  %v1026_v23 = vld [vmem:[%s1409_s1 + $0xa8] sm:$0xff]  }
   0x9   :  { %942 = vmatpush3.bf16.msra.mxu1 %v1010_v7  ;;  %879 = vmatprep.subr.bf16.mxu0 %v1011_v8  ;;  %v1027_v24 = vld [vmem:[%s1409_s1 + $0x70] sm:$0xff]   ;;  %v1031_v28 = vld [vmem:[%s1409_s1 + $0x78] sm:$0xff]   ;;  %v1298_v3 = vld [vmem:[%s1411_s2] ss:$0 sm:$0xff] }
   0xa   :  { %943 = vmatprep.subr.bf16.mxu1 %v1012_v9  ;;  %v1028_v25 = vld [vmem:[%s1409_s1 + $0xf0] sm:$0xff]   ;;  %v1032_v29 = vld [vmem:[%s1409_s1 + $0xf8] sm:$0xff]  }
   0xb   :  { %v1029_v26 = vld [vmem:[%s1409_s1 + $0x30] sm:$0xff]   ;;  %v1033_v30 = vld [vmem:[%s1409_s1 + $0x38] sm:$0xff]  }
   0xc   :  { %880 = vmatpush3.bf16.msra.mxu0 %v1013_v10  ;;  %v1030_v27 = vld [vmem:[%s1409_s1 + $0xb0] sm:$0xff]   ;;  %v1034_v31 = vld [vmem:[%s1409_s1 + $0xb8] sm:$0xff]  }
   0xd   :  { %944 = vmatpush3.bf16.msra.mxu1 %v1014_v11  ;;  %881 = vmatprep.subr.bf16.mxu0 %v1015_v12  ;;  %v1035_v32 = vld [vmem:[%s1410_s0] ss:$16 sps:$4 sm:$0xff]   ;;  %v1037_v33 = vld [vmem:[%s1410_s0 + $0x4] ss:$16 sps:$4 sm:$0xff]   ;;  %v1038_v34 = vld [vmem:[%s1410_s0 + $0x8] ss:$16 sps:$4 sm:$0xff]  }
   0xe   :  { %945 = vmatprep.subr.bf16.mxu1 %v1016_v13  ;;  %v1040_v35 = vld [vmem:[%s1410_s0 + $0xc] ss:$16 sps:$4 sm:$0xff]   ;;  %502 = vmatprep.mubr.bf16.mxu0 %v1037_v33  ;;  %v1041_v36 = vld [vmem:[%s1410_s0 + $0x24] ss:$16 sps:$4 sm:$0xff]   ;;  %v1045_v38 = vld [vmem:[%s1410_s0 + $0x20] ss:$16 sps:$4 sm:$0xff]  }
   0xf   :  { %599 = vmatprep.mubr.bf16.mxu1 %v1040_v35  ;;  %v1043_v37 = vld [vmem:[%s1410_s0 + $0x2c] ss:$16 sps:$4 sm:$0xff]   ;;  %v1046_v39 = vld [vmem:[%s1410_s0 + $0x28] ss:$16 sps:$4 sm:$0xff]   ;;  %v1047_v40 = vld [vmem:[%s1410_s0 + $0x44] ss:$16 sps:$4 sm:$0xff]  }
  0x10   :  { %882 = vmatpush3.bf16.msra.mxu0 %v1017_v14  ;;  %v1049_v41 = vld [vmem:[%s1410_s0 + $0x4c] ss:$16 sps:$4 sm:$0xff]   ;;  %v1051_v42 = vld [vmem:[%s1410_s0 + $0x40] ss:$16 sps:$4 sm:$0xff]   ;;  %v1052_v43 = vld [vmem:[%s1410_s0 + $0x48] ss:$16 sps:$4 sm:$0xff]  }
  0x11   :  { %946 = vmatpush3.bf16.msra.mxu1 %v1018_v15  ;;  %883 = vmatprep.subr.bf16.mxu0 %v1019_v16  ;;  %v1053_v44 = vld [vmem:[%s1410_s0 + $0x64] ss:$16 sps:$4 sm:$0xff]   ;;  %v1055_v45 = vld [vmem:[%s1410_s0 + $0x6c] ss:$16 sps:$4 sm:$0xff]   ;;  %v1057_v46 = vld [vmem:[%s1410_s0 + $0x60] ss:$16 sps:$4 sm:$0xff]  }
  0x12   :  { %947 = vmatprep.subr.bf16.mxu1 %v1020_v17  ;;  %v1058_v47 = vld [vmem:[%s1410_s0 + $0x68] ss:$16 sps:$4 sm:$0xff]   ;;  %v1059_v48 = vld [vmem:[%s1410_s0 + $0x84] ss:$16 sps:$4 sm:$0xff]   ;;  %v1061_v49 = vld [vmem:[%s1410_s0 + $0x8c] ss:$16 sps:$4 sm:$0xff]  }
  0x13   :  { %v1063_v50 = vld [vmem:[%s1410_s0 + $0x80] ss:$16 sps:$4 sm:$0xff]   ;;  %v1064_v51 = vld [vmem:[%s1410_s0 + $0x88] ss:$16 sps:$4 sm:$0xff]   ;;  %v1065_v52 = vld [vmem:[%s1410_s0 + $0xa4] ss:$16 sps:$4 sm:$0xff]  }
  0x14   :  { %884 = vmatpush3.bf16.msra.mxu0 %v1021_v18  ;;  %v1067_v53 = vld [vmem:[%s1410_s0 + $0xac] ss:$16 sps:$4 sm:$0xff]   ;;  %v1069_v54 = vld [vmem:[%s1410_s0 + $0xa0] ss:$16 sps:$4 sm:$0xff]   ;;  %v1070_v55 = vld [vmem:[%s1410_s0 + $0xa8] ss:$16 sps:$4 sm:$0xff]  }
  0x15   :  { %948 = vmatpush3.bf16.msra.mxu1 %v1022_v19  ;;  %885 = vmatprep.subr.bf16.mxu0 %v1023_v20  ;;  %v1071_v56 = vld [vmem:[%s1410_s0 + $0xc4] ss:$16 sps:$4 sm:$0xff]   ;;  %v1073_v57 = vld [vmem:[%s1410_s0 + $0xcc] ss:$16 sps:$4 sm:$0xff]   ;;  %v1075_v58 = vld [vmem:[%s1410_s0 + $0xc0] ss:$16 sps:$4 sm:$0xff]  }
  0x16   :  { %949 = vmatprep.subr.bf16.mxu1 %v1024_v21  ;;  %v1076_v59 = vld [vmem:[%s1410_s0 + $0xc8] ss:$16 sps:$4 sm:$0xff]   ;;  %v1077_v60 = vld [vmem:[%s1410_s0 + $0xe4] ss:$16 sps:$4 sm:$0xff]   ;;  %v1079_v61 = vld [vmem:[%s1410_s0 + $0xec] ss:$16 sps:$4 sm:$0xff]  }
  0x17   :  { %v1081_v62 = vld [vmem:[%s1410_s0 + $0xe0] ss:$16 sps:$4 sm:$0xff]   ;;  %v1082_v63 = vld [vmem:[%s1410_s0 + $0xe8] ss:$16 sps:$4 sm:$0xff]  }
  0x18   :  { %886 = vmatpush3.bf16.msra.mxu0 %v1025_v22 }
  0x19   :  { %950 = vmatpush3.bf16.msra.mxu1 %v1026_v23  ;;  %887 = vmatprep.subr.bf16.mxu0 %v1027_v24 }
  0x1a   :  { %951 = vmatprep.subr.bf16.mxu1 %v1028_v25 }
  0x1c   :  { %888 = vmatpush3.bf16.msra.mxu0 %v1029_v26 }
  0x1d   :  { %952 = vmatpush3.bf16.msra.mxu1 %v1030_v27  ;;  %889 = vmatprep.subr.bf16.mxu0 %v1031_v28 }
  0x1e   :  { %953 = vmatprep.subr.bf16.mxu1 %v1032_v29 }
  0x20   :  { %890 = vmatpush3.bf16.msra.mxu0 %v1033_v30 }
  0x21   :  { %954 = vmatpush3.bf16.msra.mxu1 %v1034_v31 }
  0x23   :  { %503 = vmatmul.mubr.bf16.vlgmr.msra.gmra.mrb[0].mxu0 %v1035_v32 }
  0x24   :  { %600 = vmatmul.mubr.bf16.vlgmr.msra.gmra.mrb[0].mxu1 %v1038_v34  ;;  %510 = vmatprep.mubr.bf16.mxu0 %v1041_v36 }
  0x25   :  { %607 = vmatprep.mubr.bf16.mxu1 %v1043_v37 }
  0x2b   :  { %511 = vmatmul.mubr.bf16.gmra.mrb[4].mxu0 %v1045_v38 }
  0x2c   :  { %608 = vmatmul.mubr.bf16.gmra.mrb[4].mxu1 %v1046_v39  ;;  %518 = vmatprep.mubr.bf16.mxu0 %v1047_v40 }
  0x2d   :  { %615 = vmatprep.mubr.bf16.mxu1 %v1049_v41 }
  0x33   :  { %519 = vmatmul.mubr.bf16.gmra.mrb[8].mxu0 %v1051_v42 }
  0x34   :  { %616 = vmatmul.mubr.bf16.gmra.mrb[8].mxu1 %v1052_v43  ;;  %526 = vmatprep.mubr.bf16.mxu0 %v1053_v44 }
  0x35   :  { %623 = vmatprep.mubr.bf16.mxu1 %v1055_v45 }
  0x3b   :  { %527 = vmatmul.mubr.bf16.gmra.mrb[12].mxu0 %v1057_v46 }
  0x3c   :  { %624 = vmatmul.mubr.bf16.gmra.mrb[12].mxu1 %v1058_v47  ;;  %534 = vmatprep.mubr.bf16.mxu0 %v1059_v48 }
  0x3d   :  { %631 = vmatprep.mubr.bf16.mxu1 %v1061_v49 }
  0x43   :  { %535 = vmatmul.mubr.bf16.gmra.mrb[16].mxu0 %v1063_v50 }
  0x44   :  { %632 = vmatmul.mubr.bf16.gmra.mrb[16].mxu1 %v1064_v51  ;;  %542 = vmatprep.mubr.bf16.mxu0 %v1065_v52 }
  0x45   :  { %639 = vmatprep.mubr.bf16.mxu1 %v1067_v53 }
  0x4b   :  { %543 = vmatmul.mubr.bf16.gmra.mrb[20].mxu0 %v1069_v54 }
  0x4c   :  { %640 = vmatmul.mubr.bf16.gmra.mrb[20].mxu1 %v1070_v55  ;;  %550 = vmatprep.mubr.bf16.mxu0 %v1071_v56 }
  0x4d   :  { %647 = vmatprep.mubr.bf16.mxu1 %v1073_v57 }
  0x53   :  { %551 = vmatmul.mubr.bf16.gmra.mrb[24].mxu0 %v1075_v58 }
  0x54   :  { %648 = vmatmul.mubr.bf16.gmra.mrb[24].mxu1 %v1076_v59  ;;  %558 = vmatprep.mubr.bf16.mxu0 %v1077_v60 }
  0x55   :  { %655 = vmatprep.mubr.bf16.mxu1 %v1079_v61 }
  0x5b   :  { %559 = vmatmul.mubr.bf16.gmra.mrb[28].mxu0 %v1081_v62 }
  0x5c   :  { %656 = vmatmul.mubr.bf16.gmra.mrb[28].mxu1 %v1082_v63 }
  0xf6   :  { %v891_v0 = vpop.f32.mrb[0].mxu0 }
  0xf7   :  { %v955_v1 = vpop.f32.mrb[0].mxu1  ;;  %v892_v2 = vpop.f32.mrb[1].mxu0 }
  0xf8   :  { %v893_v4 = vadd.f32 %v892_v2, %v891_v0  ;;  %v956_v5 = vpop.f32.mrb[1].mxu1  ;;  %v894_v6 = vpop.f32.mrb[2].mxu0 }
  0xf9   :  { %v957_v7 = vadd.f32 %v956_v5, %v955_v1  ;;  %v958_v8 = vpop.f32.mrb[2].mxu1  ;;  %v895_v9 = vpop.f32.mrb[3].mxu0 }
  0xfa   :  { %v896_v10 = vadd.f32 %v895_v9, %v894_v6  ;;  %v959_v11 = vpop.f32.mrb[3].mxu1  ;;  %v505_v12 = vadd.f32 %v893_v4, %v1298_v3 }
  0xfb   :  { %v960_v13 = vadd.f32 %v959_v11, %v958_v8 }
  0xfc   :  { %v508_v14 = vadd.f32 %v896_v10, %v1298_v3  ;;  %v602_v15 = vadd.f32 %v957_v7, %v505_v12 }
  0xfe   :  { %v897_v16 = vpop.f32.mrb[4].mxu0  ;;  %664 = vxpose.xlu0.b32.start [1/16] %v602_v15, 128  ;;  %v605_v17 = vadd.f32 %v960_v13, %v508_v14 }
  0xff   :  { %v961_v18 = vpop.f32.mrb[4].mxu1  ;;  %v898_v19 = vpop.f32.mrb[5].mxu0 }
 0x100   :  { %v899_v20 = vadd.f32 %v898_v19, %v897_v16  ;;  %v962_v21 = vpop.f32.mrb[5].mxu1  ;;  %v900_v22 = vpop.f32.mrb[6].mxu0 }
 0x101   :  { %v963_v23 = vadd.f32 %v962_v21, %v961_v18  ;;  %v964_v24 = vpop.f32.mrb[6].mxu1  ;;  %v901_v25 = vpop.f32.mrb[7].mxu0 }
 0x102   :  { %v513_v26 = vadd.f32 %v899_v20, %v1298_v3  ;;  %v902_v27 = vadd.f32 %v901_v25, %v900_v22  ;;  %v965_v28 = vpop.f32.mrb[7].mxu1  ;;  %665 = vxpose.xlu0.b32.cont [2/16] %v605_v17, 128 }
 0x103   :  { %v966_v29 = vadd.f32 %v965_v28, %v964_v24 }
 0x104   :  { %v516_v30 = vadd.f32 %v902_v27, %v1298_v3  ;;  %v610_v31 = vadd.f32 %v963_v23, %v513_v26 }
 0x106   :  { %v903_v32 = vpop.f32.mrb[8].mxu0  ;;  %666 = vxpose.xlu0.b32.cont [3/16] %v610_v31, 128  ;;  %v613_v33 = vadd.f32 %v966_v29, %v516_v30 }
 0x107   :  { %v967_v34 = vpop.f32.mrb[8].mxu1  ;;  %v904_v35 = vpop.f32.mrb[9].mxu0 }
 0x108   :  { %v905_v36 = vadd.f32 %v904_v35, %v903_v32  ;;  %v968_v37 = vpop.f32.mrb[9].mxu1  ;;  %v906_v38 = vpop.f32.mrb[10].mxu0 }
 0x109   :  { %v969_v39 = vadd.f32 %v968_v37, %v967_v34  ;;  %v970_v40 = vpop.f32.mrb[10].mxu1  ;;  %v907_v41 = vpop.f32.mrb[11].mxu0 }
 0x10a   :  { %v521_v42 = vadd.f32 %v905_v36, %v1298_v3  ;;  %v908_v43 = vadd.f32 %v907_v41, %v906_v38  ;;  %v971_v44 = vpop.f32.mrb[11].mxu1  ;;  %667 = vxpose.xlu0.b32.cont [4/16] %v613_v33, 128 }
 0x10b   :  { %v972_v45 = vadd.f32 %v971_v44, %v970_v40 }
 0x10c   :  { %v524_v46 = vadd.f32 %v908_v43, %v1298_v3  ;;  %v618_v47 = vadd.f32 %v969_v39, %v521_v42 }
 0x10e   :  { %v909_v48 = vpop.f32.mrb[12].mxu0  ;;  %668 = vxpose.xlu0.b32.cont [5/16] %v618_v47, 128  ;;  %v621_v49 = vadd.f32 %v972_v45, %v524_v46 }
 0x10f   :  { %v973_v50 = vpop.f32.mrb[12].mxu1  ;;  %v910_v51 = vpop.f32.mrb[13].mxu0 }
 0x110   :  { %v911_v52 = vadd.f32 %v910_v51, %v909_v48  ;;  %v974_v53 = vpop.f32.mrb[13].mxu1  ;;  %v912_v54 = vpop.f32.mrb[14].mxu0 }
 0x111   :  { %v975_v55 = vadd.f32 %v974_v53, %v973_v50  ;;  %v976_v56 = vpop.f32.mrb[14].mxu1  ;;  %v913_v57 = vpop.f32.mrb[15].mxu0 }
 0x112   :  { %v529_v58 = vadd.f32 %v911_v52, %v1298_v3  ;;  %v914_v59 = vadd.f32 %v913_v57, %v912_v54  ;;  %v977_v60 = vpop.f32.mrb[15].mxu1  ;;  %669 = vxpose.xlu0.b32.cont [6/16] %v621_v49, 128 }
 0x113   :  { %v978_v61 = vadd.f32 %v977_v60, %v976_v56 }
 0x114   :  { %v532_v62 = vadd.f32 %v914_v59, %v1298_v3  ;;  %v626_v63 = vadd.f32 %v975_v55, %v529_v58 }
 0x116   :  { %v915_v0 = vpop.f32.mrb[16].mxu0  ;;  %670 = vxpose.xlu0.b32.cont [7/16] %v626_v63, 128  ;;  %v629_v1 = vadd.f32 %v978_v61, %v532_v62 }
 0x117   :  { %v979_v2 = vpop.f32.mrb[16].mxu1  ;;  %v916_v4 = vpop.f32.mrb[17].mxu0 }
 0x118   :  { %v917_v5 = vadd.f32 %v916_v4, %v915_v0  ;;  %v980_v6 = vpop.f32.mrb[17].mxu1  ;;  %v918_v7 = vpop.f32.mrb[18].mxu0 }
 0x119   :  { %v981_v8 = vadd.f32 %v980_v6, %v979_v2  ;;  %v982_v9 = vpop.f32.mrb[18].mxu1  ;;  %v919_v10 = vpop.f32.mrb[19].mxu0 }
 0x11a   :  { %v537_v11 = vadd.f32 %v917_v5, %v1298_v3  ;;  %v920_v12 = vadd.f32 %v919_v10, %v918_v7  ;;  %v983_v13 = vpop.f32.mrb[19].mxu1  ;;  %671 = vxpose.xlu0.b32.cont [8/16] %v629_v1, 128 }
 0x11b   :  { %v984_v14 = vadd.f32 %v983_v13, %v982_v9 }
 0x11c   :  { %v540_v15 = vadd.f32 %v920_v12, %v1298_v3  ;;  %v634_v16 = vadd.f32 %v981_v8, %v537_v11 }
 0x11e   :  { %v921_v17 = vpop.f32.mrb[20].mxu0  ;;  %672 = vxpose.xlu0.b32.cont [9/16] %v634_v16, 128  ;;  %v637_v18 = vadd.f32 %v984_v14, %v540_v15 }
 0x11f   :  { %v985_v19 = vpop.f32.mrb[20].mxu1  ;;  %v922_v20 = vpop.f32.mrb[21].mxu0 }
 0x120   :  { %v923_v21 = vadd.f32 %v922_v20, %v921_v17  ;;  %v986_v22 = vpop.f32.mrb[21].mxu1  ;;  %v924_v23 = vpop.f32.mrb[22].mxu0 }
 0x121   :  { %v987_v24 = vadd.f32 %v986_v22, %v985_v19  ;;  %v988_v25 = vpop.f32.mrb[22].mxu1  ;;  %v925_v26 = vpop.f32.mrb[23].mxu0 }
 0x122   :  { %v545_v27 = vadd.f32 %v923_v21, %v1298_v3  ;;  %v926_v28 = vadd.f32 %v925_v26, %v924_v23  ;;  %v989_v29 = vpop.f32.mrb[23].mxu1  ;;  %673 = vxpose.xlu0.b32.cont [10/16] %v637_v18, 128 }
 0x123   :  { %v990_v30 = vadd.f32 %v989_v29, %v988_v25 }
 0x124   :  { %v548_v31 = vadd.f32 %v926_v28, %v1298_v3  ;;  %v642_v32 = vadd.f32 %v987_v24, %v545_v27 }
 0x126   :  { %v927_v33 = vpop.f32.mrb[24].mxu0  ;;  %674 = vxpose.xlu0.b32.cont [11/16] %v642_v32, 128  ;;  %v645_v34 = vadd.f32 %v990_v30, %v548_v31 }
 0x127   :  { %v991_v35 = vpop.f32.mrb[24].mxu1  ;;  %v928_v36 = vpop.f32.mrb[25].mxu0 }
 0x128   :  { %v929_v37 = vadd.f32 %v928_v36, %v927_v33  ;;  %v992_v38 = vpop.f32.mrb[25].mxu1  ;;  %v930_v39 = vpop.f32.mrb[26].mxu0 }
 0x129   :  { %v993_v40 = vadd.f32 %v992_v38, %v991_v35  ;;  %v994_v41 = vpop.f32.mrb[26].mxu1  ;;  %v931_v42 = vpop.f32.mrb[27].mxu0 }
 0x12a   :  { %v553_v43 = vadd.f32 %v929_v37, %v1298_v3  ;;  %v932_v44 = vadd.f32 %v931_v42, %v930_v39  ;;  %v995_v45 = vpop.f32.mrb[27].mxu1  ;;  %675 = vxpose.xlu0.b32.cont [12/16] %v645_v34, 128  ;;  %v717_v34 = vlaneseq }
 0x12b   :  { %v996_v46 = vadd.f32 %v995_v45, %v994_v41 }
 0x12c   :  { %v556_v47 = vadd.f32 %v932_v44, %v1298_v3  ;;  %v650_v48 = vadd.f32 %v993_v40, %v553_v43  ;;  %v718_v37 = vshrl.u32 %v717_v34, 7 }
 0x12e   :  { %v933_v49 = vpop.f32.mrb[28].mxu0  ;;  %676 = vxpose.xlu0.b32.cont [13/16] %v650_v48, 128  ;;  %v653_v50 = vadd.f32 %v996_v46, %v556_v47  ;;  %v719_v40 = vadd.s32 8, %v718_v37  ;;  %v720_v41 = vadd.s32 16, %v718_v37  ;;  %v721_v42 = vadd.s32 24, %v718_v37 }
 0x12f   :  { %v997_v51 = vpop.f32.mrb[28].mxu1  ;;  %v934_v52 = vpop.f32.mrb[29].mxu0  ;;  %v722_v43 = vadd.s32 32, %v718_v37  ;;  %v723_v44 = vadd.s32 40, %v718_v37  ;;  %v724_v45 = vadd.s32 48, %v718_v37  ;;  %v725_v47 = vadd.s32 56, %v718_v37 }
 0x130   :  { %v935_v53 = vadd.f32 %v934_v52, %v933_v49  ;;  %v998_v54 = vpop.f32.mrb[29].mxu1  ;;  %v936_v55 = vpop.f32.mrb[30].mxu0  ;;  %v726_v48 = vadd.s32 64, %v718_v37  ;;  %v727_v49 = vadd.s32 72, %v718_v37  ;;  %v730_v52 = vadd.s32 96, %v718_v37 }
 0x131   :  { %v999_v56 = vadd.f32 %v998_v54, %v997_v51  ;;  %v1000_v57 = vpop.f32.mrb[30].mxu1  ;;  %v937_v58 = vpop.f32.mrb[31].mxu0  ;;  %v729_v51 = vadd.s32 88, %v718_v37  ;;  %v732_v54 = vadd.s32 112, %v718_v37 }
 0x132   :  { %v561_v59 = vadd.f32 %v935_v53, %v1298_v3  ;;  %v938_v60 = vadd.f32 %v937_v58, %v936_v55  ;;  %v1001_v61 = vpop.f32.mrb[31].mxu1  ;;  %677 = vxpose.xlu0.b32.cont [14/16] %v653_v50, 128  ;;  %v728_v50 = vadd.s32 80, %v718_v37  ;;  %v731_v53 = vadd.s32 104, %v718_v37 }
 0x133   :  { %v1002_v62 = vadd.f32 %v1001_v61, %v1000_v57  ;;  %v733_v55 = vadd.s32 120, %v718_v37 }
 0x134   :  { %v564_v63 = vadd.f32 %v938_v60, %v1298_v3  ;;  %v658_v0 = vadd.f32 %v999_v56, %v561_v59 }
 0x136   :  { %678 = vxpose.xlu0.b32.cont [15/16] %v658_v0, 128  ;;  %v661_v1 = vadd.f32 %v1002_v62, %v564_v63 }
 0x13a   :  { %679 = vxpose.xlu0.b32.end [16/16] %v661_v1, 128 }
 0x17e   :  { %v1316_v2 = vpop.trf.xlu0 }
 0x182   :  { %v1318_v4 = vpop.trf.xlu0 }
 0x186   :  { %v1320_v5 = vpop.trf.xlu0 }
 0x18a   :  { %v1322_v6 = vpop.trf.xlu0 }
 0x18e   :  { %v1324_v7 = vpop.trf.xlu0 }
 0x18f   :  { %v696_v18 = vmin.f32 %v1316_v2, %v1324_v7 }
 0x192   :  { %v1326_v8 = vpop.trf.xlu0 }
 0x193   :  { %v697_v16 = vmin.f32 %v1318_v4, %v1326_v8 }
 0x196   :  { %v1328_v9 = vpop.trf.xlu0 }
 0x197   :  { %v698_v19 = vmin.f32 %v1320_v5, %v1328_v9 }
 0x19a   :  { %v1330_v10 = vpop.trf.xlu0 }
 0x19b   :  { %v699_v20 = vmin.f32 %v1322_v6, %v1330_v10 }
 0x19e   :  { %v1332_v3 = vpop.trf.xlu0 }
 0x19f   :  { %v700_v22 = vmin.f32 %v696_v18, %v1332_v3 }
 0x1a2   :  { %v1334_v11 = vpop.trf.xlu0 }
 0x1a3   :  { %v701_v21 = vmin.f32 %v697_v16, %v1334_v11 }
 0x1a6   :  { %v1336_v12 = vpop.trf.xlu0 }
 0x1a7   :  { %v702_v23 = vmin.f32 %v698_v19, %v1336_v12 }
 0x1aa   :  { %v1338_v13 = vpop.trf.xlu0 }
 0x1ab   :  { %v703_v24 = vmin.f32 %v699_v20, %v1338_v13 }
 0x1ae   :  { %v1340_v14 = vpop.trf.xlu0 }
 0x1af   :  { %v704_v27 = vmin.f32 %v700_v22, %v1340_v14 }
 0x1b2   :  { %v1342_v15 = vpop.trf.xlu0 }
 0x1b3   :  { %v705_v25 = vmin.f32 %v701_v21, %v1342_v15 }
 0x1b5   :  { %v708_v30 = vmin.f32 %v704_v27, %v705_v25 }
 0x1b6   :  { %v1346_v17 = vpop.trf.xlu0 }
 0x1b7   :  { %v706_v28 = vmin.f32 %v702_v23, %v1346_v17 }
 0x1ba   :  { %v1359_v26 = vpop.trf.xlu0 }
 0x1bb   :  { %v707_v29 = vmin.f32 %v703_v24, %v1359_v26 }
 0x1bd   :  { %v709_v31 = vmin.f32 %v706_v28, %v707_v29 }
 0x1bf   :  { %v710_v32 = vmin.f32 %v708_v30, %v709_v31 }
 0x1c1   :  { %v711_v33 = vrot.slane %v710_v32, 4 }
 0x1c3   :  { %v712_v35 = vmin.f32 %v710_v32, %v711_v33 }
 0x1c5   :  { %v713_v36 = vrot.slane %v712_v35, 2 }
 0x1c7   :  { %v714_v38 = vmin.f32 %v712_v35, %v713_v36 }
 0x1c9   :  { %v715_v39 = vrot.slane %v714_v38, 1 }
 0x1cb   :  { %v716_v46 = vmin.f32 %v714_v38, %v715_v39 }
 0x1cd   :  { %vm734_vm0 = vcmp.le.f32.partialorder %v1316_v2, %v716_v46  ;;  %vm735_vm1 = vcmp.le.f32.partialorder %v1318_v4, %v716_v46  ;;  %vm736_vm2 = vcmp.le.f32.partialorder %v1320_v5, %v716_v46  ;;  %vm737_vm3 = vcmp.le.f32.partialorder %v1322_v6, %v716_v46 }
 0x1ce   :  { %vm738_vm4 = vcmp.le.f32.partialorder %v1324_v7, %v716_v46  ;;  %vm739_vm5 = vcmp.le.f32.partialorder %v1326_v8, %v716_v46  ;;  %vm740_vm6 = vcmp.le.f32.partialorder %v1328_v9, %v716_v46  ;;  %vm741_vm7 = vcmp.le.f32.partialorder %v1330_v10, %v716_v46 }
 0x1cf   :  { %vm742_vm8 = vcmp.le.f32.partialorder %v1332_v3, %v716_v46  ;;  %vm743_vm9 = vcmp.le.f32.partialorder %v1334_v11, %v716_v46  ;;  %vm744_vm10 = vcmp.le.f32.partialorder %v1336_v12, %v716_v46  ;;  %vm745_vm11 = vcmp.le.f32.partialorder %v1338_v13, %v716_v46 }
 0x1d0   :  { %vm746_vm12 = vcmp.le.f32.partialorder %v1340_v14, %v716_v46  ;;  %vm747_vm13 = vcmp.le.f32.partialorder %v1342_v15, %v716_v46  ;;  %vm748_vm14 = vcmp.le.f32.partialorder %v1346_v17, %v716_v46  ;;  %v750_v56 = vsel %vm734_vm0, %v718_v37, 2147483647 }
 0x1d1   :  { %v751_v57 = vsel %vm735_vm1, %v719_v40, 2147483647  ;;  %v752_v58 = vsel %vm736_vm2, %v720_v41, 2147483647  ;;  %vm749_vm15 = vcmp.le.f32.partialorder %v1359_v26, %v716_v46  ;;  %v753_v59 = vsel %vm737_vm3, %v721_v42, 2147483647 }
 0x1d2   :  { %v754_v60 = vsel %vm738_vm4, %v722_v43, 2147483647  ;;  %v755_v61 = vsel %vm739_vm5, %v723_v44, 2147483647  ;;  %v756_v62 = vsel %vm740_vm6, %v724_v45, 2147483647 }
 0x1d3   :  { %v757_v63 = vsel %vm741_vm7, %v725_v47, 2147483647  ;;  %v758_v0 = vsel %vm742_vm8, %v726_v48, 2147483647  ;;  %vm766_vm0 = vcmp.lt.s32.totalorder %v750_v56, %v754_v60  ;;  %v759_v1 = vsel %vm743_vm9, %v727_v49, 2147483647 }
 0x1d4   :  { %v760_v2 = vsel %vm744_vm10, %v728_v50, 2147483647  ;;  %v761_v4 = vsel %vm745_vm11, %v729_v51, 2147483647  ;;  %v767_v5 = vsel %vm766_vm0, %v750_v56, %v754_v60  ;;  %v762_v6 = vsel %vm746_vm12, %v730_v52, 2147483647 }
 0x1d5   :  { %v763_v7 = vsel %vm747_vm13, %v731_v53, 2147483647  ;;  %v764_v8 = vsel %vm748_vm14, %v732_v54, 2147483647  ;;  %vm768_vm1 = vcmp.lt.s32.totalorder %v751_v57, %v755_v61  ;;  %v765_v9 = vsel %vm749_vm15, %v733_v55, 2147483647 }
 0x1d6   :  { %v769_v10 = vsel %vm768_vm1, %v751_v57, %v755_v61  ;;  %vm770_vm2 = vcmp.lt.s32.totalorder %v752_v58, %v756_v62  ;;  %vm772_vm3 = vcmp.lt.s32.totalorder %v753_v59, %v757_v63  ;;  %vm774_vm4 = vcmp.lt.s32.totalorder %v767_v5, %v758_v0 }
 0x1d7   :  { %v771_v3 = vsel %vm770_vm2, %v752_v58, %v756_v62  ;;  %v773_v11 = vsel %vm772_vm3, %v753_v59, %v757_v63  ;;  %vm776_vm5 = vcmp.lt.s32.totalorder %v769_v10, %v759_v1  ;;  %v775_v12 = vsel %vm774_vm4, %v767_v5, %v758_v0 }
 0x1d8   :  { %v777_v13 = vsel %vm776_vm5, %v769_v10, %v759_v1  ;;  %vm778_vm6 = vcmp.lt.s32.totalorder %v771_v3, %v760_v2  ;;  %vm780_vm7 = vcmp.lt.s32.totalorder %v773_v11, %v761_v4  ;;  %vm782_vm8 = vcmp.lt.s32.totalorder %v775_v12, %v762_v6 }
 0x1d9   :  { %v779_v14 = vsel %vm778_vm6, %v771_v3, %v760_v2  ;;  %v781_v15 = vsel %vm780_vm7, %v773_v11, %v761_v4  ;;  %vm784_vm9 = vcmp.lt.s32.totalorder %v777_v13, %v763_v7  ;;  %v783_v16 = vsel %vm782_vm8, %v775_v12, %v762_v6 }
 0x1da   :  { %v785_v17 = vsel %vm784_vm9, %v777_v13, %v763_v7  ;;  %vm786_vm10 = vcmp.lt.s32.totalorder %v779_v14, %v764_v8  ;;  %vm788_vm11 = vcmp.lt.s32.totalorder %v781_v15, %v765_v9 }
 0x1db   :  { %v787_v18 = vsel %vm786_vm10, %v779_v14, %v764_v8  ;;  %v789_v19 = vsel %vm788_vm11, %v781_v15, %v765_v9  ;;  %vm790_vm12 = vcmp.lt.s32.totalorder %v783_v16, %v785_v17 }
 0x1dc   :  { %v791_v20 = vsel %vm790_vm12, %v783_v16, %v785_v17  ;;  %vm792_vm13 = vcmp.lt.s32.totalorder %v787_v18, %v789_v19 }
 0x1dd   :  { %v793_v21 = vsel %vm792_vm13, %v787_v18, %v789_v19 }
 0x1de   :  { %vm794_vm14 = vcmp.lt.s32.totalorder %v791_v20, %v793_v21 }
 0x1df   :  { %v795_v22 = vsel %vm794_vm14, %v791_v20, %v793_v21 }
 0x1e0   :  { %v796_v23 = vrot.slane %v795_v22, 4 }
 0x1e2   :  { %vm797_vm15 = vcmp.lt.s32.totalorder %v795_v22, %v796_v23 }
 0x1e3   :  { %v798_v24 = vsel %vm797_vm15, %v795_v22, %v796_v23 }
 0x1e4   :  { %v799_v25 = vrot.slane %v798_v24, 2 }
 0x1e6   :  { %vm800_vm0 = vcmp.lt.s32.totalorder %v798_v24, %v799_v25 }
 0x1e7   :  { %v801_v26 = vsel %vm800_vm0, %v798_v24, %v799_v25 }
 0x1e8   :  { %v802_v27 = vrot.slane %v801_v26, 1 }
 0x1ea   :  { %vm803_vm1 = vcmp.lt.s32.totalorder %v801_v26, %v802_v27 }
 0x1eb   :  { %v804_v28 = vsel %vm803_vm1, %v801_v26, %v802_v27 }
 0x1ec   :  { %805 = vst [vmem:[%s1412_s3] sm:$0x1] %v804_v28 }

</bundles_post_ra>
